<compile_context>
chip_gen: v7x
topology: tpu7x:2x2x1
jax: 0.10.0
libtpu: 0.0.40
codegen_flags: <defaults>
</compile_context>

<pallas_src>
import functools

import numpy as np

import jax
import jax.numpy as jnp
from jax.experimental import pallas as pl
from jax.experimental.pallas import tpu as pltpu


def _round_up(n, m):
    return ((n + m - 1) // m) * m


def _mlp_kernel(x_ref,
                w1_ref, b1_ref,
                w2_ref, b2_ref,
                w3d_ref, b3d_ref,
                o_ref,
                *, compute_dtype):
    """One batch tile: 2 MXU matmuls + tanh/tanh, fused (hidden2 . dense) as a VPU
    multiply + lane reduce, then sigmoid.  Entirely row-independent, so partial last
    blocks (ragged batch) are safe."""
    # x arrives in compute_dtype already (cast done before the DMA in the wrapper).
    x = x_ref[...]

    # fc1 + tanh   (MXU matmul, f32 accumulate; bias add + tanh stay in f32)
    h = jnp.tanh(
        jnp.dot(x, w1_ref[...], preferred_element_type=jnp.float32) + b1_ref[...])

    # hidden1 + tanh (cast the f32 activation back to the MXU compute dtype if needed)
    h_in = h if h.dtype == compute_dtype else h.astype(compute_dtype)
    h = jnp.tanh(
        jnp.dot(h_in, w2_ref[...], preferred_element_type=jnp.float32) + b2_ref[...])

    # fused hidden2 . dense (no activation between them, folded host-side).
    # N=1 output -> VPU multiply + lane reduce instead of an underfilled MXU matmul.
    logit = jnp.sum(h * w3d_ref[...], axis=-1, keepdims=True) + b3d_ref[...]

    o_ref[...] = jax.nn.sigmoid(logit).astype(o_ref.dtype)


def fold_and_cast_params(params, compute_dtype=jnp.float32):
    """One-time host-side param prep:
      * fold hidden2 (H,H) and dense (H,1):  W3d = W_h2 @ W_dense, b3d = b_h2 @ W_dense + b_dense
        (exact, done in f32 — there is no nonlinearity between those two layers)
      * cast the two remaining matmul weights to the MXU compute dtype (f32 or bf16).
    Note: on v5e the VPU/EUP have no bf16, so bf16 only buys MXU input width + DMA bytes.
    """
    compute_dtype = np.dtype(compute_dtype)
    w_h2 = params["w_h2"].astype(jnp.float32)
    w_d = params["w_dense"].astype(jnp.float32)
    w3d = w_h2 @ w_d                                                     # (H, 1)
    b3d = params["b_h2"].astype(jnp.float32) @ w_d + params["b_dense"]   # (1, 1)
    return {
        "w_fc1": params["w_fc1"].astype(compute_dtype),
        "b_fc1": params["b_fc1"].astype(jnp.float32),
        "w_h1": params["w_h1"].astype(compute_dtype),
        "b_h1": params["b_h1"].astype(jnp.float32),
        "w3d": jnp.transpose(w3d).astype(jnp.float32),                   # (1, H) broadcast row
        "b3d": b3d.astype(jnp.float32),                                  # (1, 1)
    }


@functools.partial(jax.jit, static_argnames=("block_b", "compute_dtype"))
def binary_classifier_forward(x, folded, *, block_b=4096, compute_dtype=jnp.float32):
    """x: (B, input_features). folded: output of fold_and_cast_params."""
    compute_dtype = np.dtype(compute_dtype)
    B, F = x.shape
    H = folded["w_fc1"].shape[1]

    # Cast x BEFORE the pallas_call so the HBM->VMEM DMA (the dominant data stream)
    # moves the narrow dtype; no per-tile VPU cast inside the kernel.
    if x.dtype != compute_dtype:
        x = x.astype(compute_dtype)

    # ---- batch-tile selection -------------------------------------------------------
    # * as large as block_b allows: per-grid-step overhead (~0.35us) dominates tiny tiles
    # * keep >= 2 grid steps when the batch is big enough so ("parallel",) spreads work
    #   across both v7x TensorCores (no-op on single-TC v5e/v6e)
    # * sublane-aligned block (8 rows for f32, 16 for bf16); tiny batches use a single
    #   full block (block == full dim -> no alignment constraint, no padding needed)
    itemsize = int(compute_dtype.itemsize)
    sublane = 8 * (4 // itemsize)                 # f32 -> 8, bf16 -> 16
    if B <= max(16, sublane):
        TB = B                                    # single full block
    else:
        TB = min(int(block_b), B)
        if TB > pl.cdiv(B, 2):                    # v7x: keep at least 2 parallel steps
            TB = pl.cdiv(B, 2)
        TB = _round_up(TB, sublane)
    num_tiles = pl.cdiv(B, TB)                    # partial last block handled by Pallas
                                                  # (NO host-side jnp.pad pass over x)

    # ---- scoped-VMEM budget ----------------------------------------------------------
    # F=32 / H=64 / out=1 all lane-pad to 128 lanes.  x and out are double-buffered by
    # the pipeline; add headroom for live f32 activation temporaries + resident weights.
    lanes = 128
    vmem_limit = (2 * TB * lanes * itemsize       # x tile, 2 buffers
                  + 2 * TB * lanes * 4            # out tile, 2 buffers (f32)
                  + 4 * TB * lanes * 4            # f32 activation temporaries headroom
                  + (2 << 20))                    # weights (<100 KiB) + slack
    vmem_limit = int(max(4 << 20, min(vmem_limit, 64 << 20)))

    kernel = functools.partial(_mlp_kernel, compute_dtype=compute_dtype)

    def resident(shape):
        # Whole-array block with a constant index_map: stays VMEM-resident across batch
        # tiles (not re-DMA'd per grid step).  Total weight footprint < 100 KiB, so the
        # default buffering is already negligible.
        return pl.BlockSpec(shape, lambda i: (0, 0))

    out = pl.pallas_call(
        kernel,
        out_shape=jax.ShapeDtypeStruct((B, 1), jnp.float32),
        grid=(num_tiles,),
        in_specs=[
            pl.BlockSpec((TB, F), lambda i: (i, 0)),   # batch-tiled x (double-buffered)
            resident((F, H)), resident((1, H)),        # fc1
            resident((H, H)), resident((1, H)),        # hidden1
            resident((1, H)), resident((1, 1)),        # folded hidden2 . dense
        ],
        out_specs=pl.BlockSpec((TB, 1), lambda i: (i, 0)),
        compiler_params=pltpu.CompilerParams(
            dimension_semantics=("parallel",),         # megacore sharding on v7x
            vmem_limit_bytes=vmem_limit),
    )(
        x,
        folded["w_fc1"], folded["b_fc1"],
        folded["w_h1"], folded["b_h1"],
        folded["w3d"], folded["b3d"],
    )

    # torch's x.squeeze() on (B, 1) -> (B,).
    # (For B == 1 torch returns a 0-d tensor; we keep shape (1,) — edge-case shape only.)
    return jnp.squeeze(out, axis=-1)


def _xavier_uniform(key, fan_in, fan_out):
    """Matches nn.init.xavier_uniform_ (gain=1) on a (out, in) weight; stored as (in, out)."""
    limit = jnp.sqrt(6.0 / (fan_in + fan_out))
    return jax.random.uniform(key, (fan_in, fan_out), jnp.float32, -limit, limit)


def init_params(key, input_features, hidden_dim, output_dim):
    k1, k2, k3, kd = jax.random.split(key, 4)
    params = {
        "w_fc1": _xavier_uniform(k1, input_features, hidden_dim),
        "b_fc1": jnp.zeros((1, hidden_dim), jnp.float32),
        "w_h1": _xavier_uniform(k2, hidden_dim, hidden_dim),
        "b_h1": jnp.zeros((1, hidden_dim), jnp.float32),
        "w_h2": _xavier_uniform(k3, hidden_dim, hidden_dim),
        "b_h2": jnp.zeros((1, hidden_dim), jnp.float32),
        # `dense` in PyTorch uses default init (kaiming-uniform); deterministic synthetic init here.
        "w_dense": _xavier_uniform(kd, hidden_dim, 1),
        "b_dense": jnp.zeros((1, 1), jnp.float32),
    }
    # `self.outpt` (hidden_dim -> output_dim) is defined but unused in forward; omitted.
    del output_dim
    return params


if __name__ == "__main__":
    batch = 8
    input_features = 32
    hidden_dim = 64
    output_dim = 1

    key = jax.random.PRNGKey(0)
    kx, kp = jax.random.split(key)
    x = jax.random.normal(kx, (batch, input_features), jnp.float32)
    params = init_params(kp, input_features, hidden_dim, output_dim)

    # Pure-JAX reference of the ORIGINAL (unfolded) forward.
    def ref(x, p):
        h = jnp.tanh(x @ p["w_fc1"] + p["b_fc1"])
        h = jnp.tanh(h @ p["w_h1"] + p["b_h1"])
        h = h @ p["w_h2"] + p["b_h2"]                      # hidden2: no activation
        return jnp.squeeze(jax.nn.sigmoid(h @ p["w_dense"] + p["b_dense"]), axis=-1)

    y_ref = ref(x, params)

    # --- f32 path, small batch (single full-block grid step) ---
    folded_f32 = fold_and_cast_params(params, jnp.float32)
    y = jax.block_until_ready(
        binary_classifier_forward(x, folded_f32, compute_dtype=jnp.float32))
    assert y.shape == (batch,), y.shape
    assert bool(jnp.all((y > 0.0) & (y < 1.0))), y
    assert bool(jnp.allclose(y, y_ref, atol=1e-5, rtol=1e-5)), (y, y_ref)

    # --- multi-tile grid with a ragged (partial) last block, NO host-side padding ---
    big_b = 300
    xb = jax.random.normal(jax.random.PRNGKey(1), (big_b, input_features), jnp.float32)
    yb = jax.block_until_ready(
        binary_classifier_forward(xb, folded_f32, block_b=128, compute_dtype=jnp.float32))
    assert yb.shape == (big_b,), yb.shape
    assert bool(jnp.allclose(yb, ref(xb, params), atol=1e-5, rtol=1e-5))

    # --- bf16 MXU path (bf16 x DMA, f32 accumulate, f32 tanh/sigmoid) ---
    folded_bf16 = fold_and_cast_params(params, jnp.bfloat16)
    yh = jax.block_until_ready(
        binary_classifier_forward(x, folded_bf16, compute_dtype=jnp.bfloat16))
    assert yh.shape == (batch,), yh.shape
    assert bool(jnp.allclose(yh, y_ref, atol=2e-2, rtol=2e-2)), (yh, y_ref)

    print("KERNEL_OK")
</pallas_src>

<mosaic_0001>
module attributes {stable_mosaic.version = 11 : i64} {
  func.func @_mlp_kernel(%arg0: i32, %arg1: memref<8x32xf32, #tpu.memory_space<vmem>>, %arg2: memref<32x64xf32, #tpu.memory_space<vmem>>, %arg3: memref<1x64xf32, #tpu.memory_space<vmem>>, %arg4: memref<64x64xf32, #tpu.memory_space<vmem>>, %arg5: memref<1x64xf32, #tpu.memory_space<vmem>>, %arg6: memref<1x64xf32, #tpu.memory_space<vmem>>, %arg7: memref<1x1xf32, #tpu.memory_space<vmem>>, %arg8: memref<8x1xf32, #tpu.memory_space<vmem>>) attributes {dimension_semantics = [#tpu.dimension_semantics<parallel>], iteration_bounds = array<i64: 1>, scalar_prefetch = 0 : i64, scratch_operands = 0 : i64, tpu.core_type = #tpu.core_type<tc>, window_params = [{transform_indices = @transform_0, window_bounds = array<i64: 8, 32>}, {pipeline_mode = #tpu.pipeline_mode<synchronous>, transform_indices = @transform_1, window_bounds = array<i64: 32, 64>}, {pipeline_mode = #tpu.pipeline_mode<synchronous>, transform_indices = @transform_2, window_bounds = array<i64: 1, 64>}, {pipeline_mode = #tpu.pipeline_mode<synchronous>, transform_indices = @transform_3, window_bounds = array<i64: 64, 64>}, {pipeline_mode = #tpu.pipeline_mode<synchronous>, transform_indices = @transform_4, window_bounds = array<i64: 1, 64>}, {pipeline_mode = #tpu.pipeline_mode<synchronous>, transform_indices = @transform_5, window_bounds = array<i64: 1, 64>}, {pipeline_mode = #tpu.pipeline_mode<synchronous>, transform_indices = @transform_6, window_bounds = array<i64: 1, 1>}, {transform_indices = @transform_7, window_bounds = array<i64: 8, 1>}]} {
    %c0 = arith.constant 0 : index
    %c0_0 = arith.constant 0 : index
    %0 = vector.load %arg1[%c0, %c0_0] : memref<8x32xf32, #tpu.memory_space<vmem>>, vector<8x32xf32>
    %c0_1 = arith.constant 0 : index
    %c0_2 = arith.constant 0 : index
    %1 = vector.load %arg2[%c0_1, %c0_2] : memref<32x64xf32, #tpu.memory_space<vmem>>, vector<32x64xf32>
    %cst = arith.constant dense<0.000000e+00> : vector<8x64xf32>
    %2 = tpu.matmul %0, %1, %cst {dimension_numbers = #tpu.dot_dimension_numbers<[1], [0], [0], [1], [0, 0, 1, 1], [], []>} : vector<8x32xf32>, vector<32x64xf32>, vector<8x64xf32> -> vector<8x64xf32>
    %c0_3 = arith.constant 0 : index
    %c0_4 = arith.constant 0 : index
    %3 = vector.load %arg3[%c0_3, %c0_4] : memref<1x64xf32, #tpu.memory_space<vmem>>, vector<1x64xf32>
    %4 = vector.broadcast %3 : vector<1x64xf32> to vector<8x64xf32>
    %5 = arith.addf %2, %4 : vector<8x64xf32>
    %6 = math.tanh %5 : vector<8x64xf32>
    %c0_5 = arith.constant 0 : index
    %c0_6 = arith.constant 0 : index
    %7 = vector.load %arg4[%c0_5, %c0_6] : memref<64x64xf32, #tpu.memory_space<vmem>>, vector<64x64xf32>
    %cst_7 = arith.constant dense<0.000000e+00> : vector<8x64xf32>
    %8 = tpu.matmul %6, %7, %cst_7 {dimension_numbers = #tpu.dot_dimension_numbers<[1], [0], [0], [1], [0, 0, 1, 1], [], []>} : vector<8x64xf32>, vector<64x64xf32>, vector<8x64xf32> -> vector<8x64xf32>
    %c0_8 = arith.constant 0 : index
    %c0_9 = arith.constant 0 : index
    %9 = vector.load %arg5[%c0_8, %c0_9] : memref<1x64xf32, #tpu.memory_space<vmem>>, vector<1x64xf32>
    %10 = vector.broadcast %9 : vector<1x64xf32> to vector<8x64xf32>
    %11 = arith.addf %8, %10 : vector<8x64xf32>
    %12 = math.tanh %11 : vector<8x64xf32>
    %c0_10 = arith.constant 0 : index
    %c0_11 = arith.constant 0 : index
    %13 = vector.load %arg6[%c0_10, %c0_11] : memref<1x64xf32, #tpu.memory_space<vmem>>, vector<1x64xf32>
    %14 = vector.broadcast %13 : vector<1x64xf32> to vector<8x64xf32>
    %15 = arith.mulf %12, %14 : vector<8x64xf32>
    %cst_12 = arith.constant dense<0.000000e+00> : vector<8xf32>
    %16 = vector.multi_reduction <add>, %15, %cst_12 [1] : vector<8x64xf32> to vector<8xf32>
    %17 = vector.shape_cast %16 : vector<8xf32> to vector<8x1xf32>
    %c0_13 = arith.constant 0 : index
    %c0_14 = arith.constant 0 : index
    %18 = vector.load %arg7[%c0_13, %c0_14] : memref<1x1xf32, #tpu.memory_space<vmem>>, vector<1x1xf32>
    %19 = vector.broadcast %18 : vector<1x1xf32> to vector<8x1xf32>
    %20 = arith.addf %17, %19 : vector<8x1xf32>
    %21 = arith.negf %20 : vector<8x1xf32>
    %22 = math.exp %21 : vector<8x1xf32>
    %cst_15 = arith.constant 1.000000e+00 : f32
    %23 = vector.broadcast %cst_15 : f32 to vector<8x1xf32>
    %24 = arith.addf %23, %22 : vector<8x1xf32>
    %25 = arith.divf %23, %24 : vector<8x1xf32>
    %c0_16 = arith.constant 0 : index
    %c0_17 = arith.constant 0 : index
    %26 = vector.load %arg8[%c0_16, %c0_17] : memref<8x1xf32, #tpu.memory_space<vmem>>, vector<8x1xf32>
    tpu.vector_store %arg8[%c0_16, %c0_17], %25 {strides = array<i32>} : memref<8x1xf32, #tpu.memory_space<vmem>>, vector<8x1xf32>,
    return
  }
  func.func @transform_0(%arg0: i32) -> (i32, i32) {
    %c0_i32 = arith.constant 0 : i32
    %c0_i32_0 = arith.constant 0 : i32
    return %arg0, %c0_i32 : i32, i32
  }
  func.func @transform_1(%arg0: i32) -> (i32, i32) {
    %c0_i32 = arith.constant 0 : i32
    %c0_i32_0 = arith.constant 0 : i32
    %c0_i32_1 = arith.constant 0 : i32
    return %c0_i32, %c0_i32_0 : i32, i32
  }
  func.func @transform_2(%arg0: i32) -> (i32, i32) {
    %c0_i32 = arith.constant 0 : i32
    %c0_i32_0 = arith.constant 0 : i32
    %c0_i32_1 = arith.constant 0 : i32
    return %c0_i32, %c0_i32_0 : i32, i32
  }
  func.func @transform_3(%arg0: i32) -> (i32, i32) {
    %c0_i32 = arith.constant 0 : i32
    %c0_i32_0 = arith.constant 0 : i32
    %c0_i32_1 = arith.constant 0 : i32
    return %c0_i32, %c0_i32_0 : i32, i32
  }
  func.func @transform_4(%arg0: i32) -> (i32, i32) {
    %c0_i32 = arith.constant 0 : i32
    %c0_i32_0 = arith.constant 0 : i32
    %c0_i32_1 = arith.constant 0 : i32
    return %c0_i32, %c0_i32_0 : i32, i32
  }
  func.func @transform_5(%arg0: i32) -> (i32, i32) {
    %c0_i32 = arith.constant 0 : i32
    %c0_i32_0 = arith.constant 0 : i32
    %c0_i32_1 = arith.constant 0 : i32
    return %c0_i32, %c0_i32_0 : i32, i32
  }
  func.func @transform_6(%arg0: i32) -> (i32, i32) {
    %c0_i32 = arith.constant 0 : i32
    %c0_i32_0 = arith.constant 0 : i32
    %c0_i32_1 = arith.constant 0 : i32
    return %c0_i32, %c0_i32_0 : i32, i32
  }
  func.func @transform_7(%arg0: i32) -> (i32, i32) {
    %c0_i32 = arith.constant 0 : i32
    %c0_i32_0 = arith.constant 0 : i32
    return %arg0, %c0_i32 : i32, i32
  }
}

</mosaic_0001>

<bundles_post_ra>
// kernel: binary_classifier_forward.1
= control target key start
LH: loop header
LB: loop body
LE: loop exit
PB: predicated region body
PF: predicated region fallthrough
CT: control target
= control target key end

     0   :  { %s537_s0 = inlined_call_operand.hbm [shape: f32[8,32], index: 0, kind: input, shape index: {}]   ;;  %s538_s1 = inlined_call_operand.hbm [shape: f32[32,64], index: 1, kind: input, shape index: {}]   ;;  %s539_s2 = inlined_call_operand.vmem [shape: f32[1,64], index: 2, kind: input, shape index: {}]   ;;  %s540_s3 = inlined_call_operand.hbm [shape: f32[64,64], index: 3, kind: input, shape index: {}]   ;;  %s541_s4 = inlined_call_operand.vmem [shape: f32[1,64], index: 4, kind: input, shape index: {}]   ;;  %s542_s5 = inlined_call_operand.vmem [shape: f32[1,64], index: 5, kind: input, shape index: {}]   ;;  %s543_s6 = inlined_call_operand.<no memory space> [shape: f32[1,1], index: 6, kind: input, shape index: {}]   ;;  %s544_s7 = inlined_call_operand.vmem [shape: f32[8,1], index: 7, kind: output, shape index: {}]  }
   0x1   :  { %v12_v0 = vstv %s543_s6 }
   0x2   :  { %13 = vst [vmem:[#allocation2] sm:$0x1] %v12_v0 }
   0x3   :  { %14 = vsyncpa [#allocation4], 0 }
   0x4   :  { %15 = vsyncpa [#allocation6], 0  ;;  %s432_s26 = smov [#allocation5]   ;;  %s362_s30 = scalar_lea.hbm %s538_s1, 512 }
   0x5   :  { %s31_s27 = sshll.u32 %s432_s26, 4  ;;  %p363_p0 = scmp.ne.s32.totalorder %s538_s1, %s362_s30  ;;  %s32_s27 = int_to_ptr.vmem [resolvable:$true] %s31_s27 }
   0x6   :  { %p366_p1 = scmp.lt.u32.totalorder %s362_s30, %s538_s1 }
   0x8   :  { %p368_p2 = pnand %p366_p1, %p363_p0 }
   0xa   :  { %371 = shalt.err (!%p368_p2)
}
   0xb   :  { %s372_s6 = scalar_lea.vmem %s32_s27, 512  ;;  %p377_p4 = scmp.lt.s32.totalorder %s32_s27, %s32_s27 }
   0xc   :  { %p373_p3 = scmp.ne.s32.totalorder %s32_s27, %s372_s6  ;;  %p378_p5 = scmp.lt.s32.totalorder %s372_s6, %s372_s6 }
   0xe   :  { %p379_p6 = por %p378_p5, %p377_p4 }
  0x10   :  { %p380_p7 = pnand %p379_p6, %p373_p3 }
  0x12   :  { %383 = shalt.err (!%p380_p7)
}
  0x13   :  { %s433_s12 = smov 128   ;;  %s434_s13 = smov 8  }
  0x14   :  { %37 = dma.hbm_to_vmem [thread:$0]  %s538_s1, 512, %s32_s27, [#allocation6], %s433_s12, %s433_s12, %s434_s13  }
  0x15   :  { %s435_s16 = smov [#allocation3]   ;;  %s436_s18 = smov [#allocation7]  }
  0x16   :  { %s22_s17 = sshll.u32 %s435_s16, 4  ;;  %s45_s19 = sshll.u32 %s436_s18, 4  ;;  %s23_s17 = int_to_ptr.vmem [resolvable:$true] %s22_s17  ;;  %s46_s19 = int_to_ptr.vmem [resolvable:$true] %s45_s19 }
  0x17   :  { %s384_s22 = scalar_lea.hbm %s537_s0, 128 }
  0x18   :  { %p385_p8 = scmp.ne.s32.totalorder %s537_s0, %s384_s22  ;;  %p388_p9 = scmp.lt.u32.totalorder %s384_s22, %s537_s0 }
  0x1a   :  { %p390_p10 = pnand %p388_p9, %p385_p8 }
  0x1c   :  { %393 = shalt.err (!%p390_p10)
}
  0x1d   :  { %s394_s1 = scalar_lea.vmem %s23_s17, 128  ;;  %p399_p12 = scmp.lt.s32.totalorder %s23_s17, %s23_s17 }
  0x1e   :  { %p395_p11 = scmp.ne.s32.totalorder %s23_s17, %s394_s1  ;;  %p400_p13 = scmp.lt.s32.totalorder %s394_s1, %s394_s1 }
  0x20   :  { %p401_p0 = por %p400_p13, %p399_p12 }
  0x22   :  { %p402_p1 = pnand %p401_p0, %p395_p11 }
  0x24   :  { %405 = shalt.err (!%p402_p1)
}
  0x25   :  { %25 = dma.hbm_to_vmem [thread:$0]  %s537_s0, 128, %s23_s17, [#allocation4]  }
  0x26   :  { %s406_s8 = scalar_lea.hbm %s540_s3, 1024 }
  0x27   :  { %p407_p2 = scmp.ne.s32.totalorder %s540_s3, %s406_s8  ;;  %p410_p3 = scmp.lt.u32.totalorder %s406_s8, %s540_s3 }
  0x29   :  { %p412_p4 = pnand %p410_p3, %p407_p2 }
  0x2b   :  { %415 = shalt.err (!%p412_p4)
}
  0x2c   :  { %s416_s14 = scalar_lea.vmem %s46_s19, 1024  ;;  %p421_p6 = scmp.lt.s32.totalorder %s46_s19, %s46_s19 }
  0x2d   :  { %p417_p5 = scmp.ne.s32.totalorder %s46_s19, %s416_s14  ;;  %p422_p7 = scmp.lt.s32.totalorder %s416_s14, %s416_s14 }
  0x2f   :  { %p423_p8 = por %p422_p7, %p421_p6 }
  0x31   :  { %p424_p9 = pnand %p423_p8, %p417_p5 }
  0x33   :  { %427 = shalt.err (!%p424_p9)
}
  0x34   :  { %51 = dma.hbm_to_vmem [thread:$0]  %s540_s3, 1024, %s46_s19, [#allocation6], %s433_s12, %s433_s12, %s434_s13  }
  0x35   :  { %428 = dma.done.wait [#allocation4], 128  }
  0x36   :  { %429 = vsyncadd [#allocation4], 4294967168 }
  0x37   :  { %430 = dma.done.wait [#allocation6], 1536  }
  0x38   :  { %431 = vsyncadd [#allocation6], 4294965760  ;;  %v437_v1 = vmov 0.0|0.0   ;;  %vm438_vm0 = vmmov 0   ;;  %v439_v2 = vmov 0.0   ;;  %v68_v3 = vld [vmem:[#allocation5] sm:$0xff] }
  0x39   :  { %328 = vmatprep.subr.bf16.mxu0 %v437_v1  ;;  %306 = vmatprep.mubr.msk.f32.mxu0 %vm438_vm0, %v439_v2  ;;  %v69_v4 = vld [vmem:[#allocation5 + $0x8] sm:$0xff]  ;;  %v70_v5 = vld [vmem:[#allocation5 + $0x10] sm:$0xff]  ;;  %v71_v7 = vld [vmem:[#allocation5 + $0x18] sm:$0xff]  ;;  %vm79_vm1 = vcmask 261120   ;;  %vm169_vm2 = vcmask 523264   ;;  %vm269_vm3 = vcmask 7168  }
  0x3a   :  { %334 = vmatprep.subr.bf16.mxu1 %v437_v1  ;;  %325 = vmatprep.mubr.msk.f32.mxu1 %vm438_vm0, %v439_v2  ;;  %v329_v6 = vpack.c.bf16 %v69_v4, %v68_v3  ;;  %v154_v8 = vld [vmem:[#allocation7] sm:$0xff]  ;;  %v155_v9 = vld [vmem:[#allocation7 + $0x8] sm:$0xff]  ;;  %v332_v10 = vpack.c.bf16 %v71_v7, %v70_v5  ;;  %v67_v12 = vld [vmem:[#allocation3] sm:$0xff] }
  0x3b   :  { %v335_v11 = vpack.c.bf16 %v155_v9, %v154_v8  ;;  %v156_v13 = vld [vmem:[#allocation7 + $0x10] sm:$0xff]  ;;  %v157_v14 = vld [vmem:[#allocation7 + $0x18] sm:$0xff]  ;;  %v158_v16 = vld [vmem:[#allocation7 + $0x20] sm:$0xff] }
  0x3c   :  { %330 = vmatpush3.bf16.msra.mxu0 %v329_v6  ;;  %v338_v15 = vpack.c.bf16 %v157_v14, %v156_v13  ;;  %v159_v17 = vld [vmem:[#allocation7 + $0x28] sm:$0xff]  ;;  %v160_v19 = vld [vmem:[#allocation7 + $0x30] sm:$0xff]  ;;  %v161_v20 = vld [vmem:[#allocation7 + $0x38] sm:$0xff] }
  0x3d   :  { %331 = vmatprep.subr.bf16.mxu0 %v437_v1  ;;  %336 = vmatpush3.bf16.msra.mxu1 %v335_v11  ;;  %v341_v18 = vpack.c.bf16 %v159_v17, %v158_v16  ;;  %v344_v21 = vpack.c.bf16 %v161_v20, %v160_v19  ;;  %v277_v22 = vld [vmem:[%s539_s2] ss:$0 sm:$0xff] }
  0x3e   :  { %337 = vmatprep.subr.bf16.mxu1 %v437_v1  ;;  %v279_v27 = vld [vmem:[%s541_s4] ss:$0 sm:$0xff] }
  0x3f   :  { %v281_v31 = vld [vmem:[%s542_s5] ss:$0 sm:$0xff] }
  0x40   :  { %333 = vmatpush3.bf16.msra.mxu0 %v332_v10  ;;  %v282_v35 = vld [vmem:[#allocation2] ss:$0 sm:$0xff] }
  0x41   :  { %339 = vmatpush3.bf16.msra.mxu1 %v338_v15 }
  0x42   :  { %340 = vmatprep.subr.bf16.mxu1 %v437_v1 }
  0x43   :  { %307 = vmatmul.mubr.msk.f32.vlgmr.msra.gmra.mrb[0].mxu0 %vm79_vm1, %v67_v12 }
  0x45   :  { %342 = vmatpush3.bf16.msra.mxu1 %v341_v18 }
  0x46   :  { %343 = vmatprep.subr.bf16.mxu1 %v437_v1 }
  0x49   :  { %345 = vmatpush3.bf16.msra.mxu1 %v344_v21 }
 0x116   :  { %v149_v23 = vpop.f32.mrb[0].mxu0 }
 0x117   :  { %v150_v24 = vadd.f32 %v277_v22, %v149_v23  ;;  %v308_v25 = vpop.f32.mrb[1].mxu0 }
 0x119   :  { %354 = vtanh.f32 %v150_v24 }
 0x123   :  { %v355_v26 = vpop.eup %354 }
 0x124   :  { %326 = vmatmul.mubr.msk.f32.vlgmr.msra.gmra.mrb[0].mxu1 %vm169_vm2, %v355_v26 }
 0x1f7   :  { %v239_v28 = vpop.f32.mrb[0].mxu1 }
 0x1f8   :  { %v240_v29 = vadd.f32 %v279_v27, %v239_v28  ;;  %v327_v30 = vpop.f32.mrb[1].mxu1 }
 0x1fa   :  { %356 = vtanh.f32 %v240_v29 }
 0x204   :  { %v357_v32 = vpop.eup %356 }
 0x205   :  { %v251_v33 = vmul.f32 %v357_v32, %v281_v31 }
 0x207   :  { %v252_v34 = vsel %vm169_vm2, %v251_v33, 0.0 }
 0x208   :  { %253 = vadd.xlane.f32.xlu0 %v252_v34 }
 0x295   :  { %v254_v36 = vpop.xlane.xlu0 %253 }
 0x296   :  { %v262_v37 = vadd.f32 %v282_v35, %v254_v36 }
 0x298   :  { %v283_v38 = vmul.f32 -1.442695, %v262_v37 }
 0x29a   :  { %358 = vpow2.f32 %v283_v38 }
 0x2a4   :  { %v359_v39 = vpop.eup %358 }
 0x2a5   :  { %v266_v40 = vadd.f32 1.0, %v359_v39 }
 0x2a7   :  { %360 = vrcp.f32 %v266_v40 }
 0x2b1   :  { %v361_v41 = vpop.eup %360 }
 0x2b2   :  { %270 = vst.msk [vmem:[%s544_s7] sm:$0xff] %vm269_vm3, %v361_v41 }
 0x2b3   :  { %275 = vsyncpa [#allocation4], 1 }
 0x2b4   :  { %276 = vsyncpa [#allocation6], 1 }

</bundles_post_ra>
